<compile_context>
chip_gen: v6e
topology: v6e:2x2x1
jax: 0.10.0
libtpu: 0.0.40
codegen_flags: <defaults>
</compile_context>

<pallas_src>
import math

import jax
import jax.numpy as jnp
from jax.experimental import pallas as pl
from jax.experimental.pallas import tpu as pltpu


_DEFAULT_TARGET_BLOCK_BYTES = 4 * 1024 * 1024   # ~4 MiB blocks: near HBM roofline plateau
_DEFAULT_VMEM_LIMIT_BYTES = 32 * 1024 * 1024    # fits v7x's 64 MiB physical VMEM; safe on v5e/v6e
_DEFAULT_MIN_PALLAS_BYTES = 1 * 1024 * 1024     # below this, the fused XLA slice is faster


def _copy_kernel(x_ref, o_ref):
    # Input block already excludes everything past the kept region.
    o_ref[...] = x_ref[...]


def _slice_kernel(x_ref, o_ref):
    # Input block carries ceil(l_out/128)*128 (or full L) columns; keep l_out.
    l_out = o_ref.shape[-1]
    o_ref[...] = x_ref[:, :l_out]


def _sublane_multiple(dtype) -> int:
    # Packed sublanes: f32 -> 8, bf16/f16 -> 16, int8/fp8 -> 32.
    return max(8, 8 * (4 // jnp.dtype(dtype).itemsize))


def _choose_tile_rows(rows: int, row_bytes: int, sub_mult: int, target_bytes: int) -> int:
    """Row tile: multiple of the dtype's sublane packing, ~target_bytes per input buffer."""
    if rows <= sub_mult:
        return rows  # full-dim rule covers rows not divisible by sub_mult
    tr = int(target_bytes // max(row_bytes, 1))
    tr = max(sub_mult, (tr // sub_mult) * sub_mult)
    rows_rounded = pl.cdiv(rows, sub_mult) * sub_mult
    # If everything would fit in one block but the copy is big enough to split,
    # force >= 2 grid steps so v7x's two TensorCores both get work.
    if tr >= rows_rounded and rows * row_bytes >= 2 * 1024 * 1024:
        tr = pl.cdiv(pl.cdiv(rows, 2), sub_mult) * sub_mult
    return min(tr, rows_rounded)


def chomp1d(x: jax.Array, chomp_size: int, *,
            min_pallas_bytes: int = _DEFAULT_MIN_PALLAS_BYTES,
            target_block_bytes: int = _DEFAULT_TARGET_BLOCK_BYTES) -> jax.Array:
    """Pallas implementation of Chomp1d.forward (works for any rank >= 1)."""
    if chomp_size <= 0:
        return x
    *lead, l = x.shape
    l_out = l - chomp_size
    if l_out <= 0:
        # PyTorch returns an empty tensor here; no kernel needed.
        return x[..., :0]

    rows = math.prod(lead)
    itemsize = jnp.dtype(x.dtype).itemsize
    out_bytes = rows * l_out * itemsize
    if rows == 0 or out_bytes < min_pallas_bytes:
        # Launch + pipeline prologue dominates tiny copies; fused XLA slice wins.
        return x[..., :l_out]

    x2 = x.reshape(rows, l)  # free: leading-dim-only reshape
    sub_mult = _sublane_multiple(x.dtype)

    # Columns we actually need to read (pad l_out up to a lane multiple so the
    # BlockSpec stays legal; the rest of the chomped tail is never DMA'd).
    in_cols = min(l, pl.cdiv(l_out, 128) * 128)
    row_bytes = in_cols * itemsize

    if row_bytes * sub_mult <= target_block_bytes:
        # ---- Row-tiled path (1-D grid) ----
        tile_r = _choose_tile_rows(rows, row_bytes, sub_mult, target_block_bytes)
        grid = (pl.cdiv(rows, tile_r),)
        kernel = _copy_kernel if in_cols == l_out else _slice_kernel
        in_specs = [pl.BlockSpec((tile_r, in_cols), lambda i: (i, 0))]
        out_specs = pl.BlockSpec((tile_r, l_out), lambda i: (i, 0))
        dim_sem = ("parallel",)
        read_cols = in_cols
    else:
        # ---- Column-tiled path (2-D grid): a single row is too wide for one
        # VMEM block, so also tile the time axis in 128-lane multiples. ----
        tile_r = rows if rows <= sub_mult else sub_mult
        tile_c = int(target_block_bytes // max(tile_r * itemsize, 1))
        tile_c = max(128, (tile_c // 128) * 128)
        tile_c = min(tile_c, pl.cdiv(l_out, 128) * 128)
        grid = (pl.cdiv(rows, tile_r), pl.cdiv(l_out, tile_c))
        kernel = _copy_kernel
        in_specs = [pl.BlockSpec((tile_r, tile_c), lambda i, j: (i, j))]
        out_specs = pl.BlockSpec((tile_r, tile_c), lambda i, j: (i, j))
        dim_sem = ("parallel", "parallel")
        read_cols = min(l, grid[1] * tile_c)

    cost = pl.CostEstimate(
        flops=0, transcendentals=0,
        bytes_accessed=int(rows * (read_cols + l_out) * itemsize))

    out = pl.pallas_call(
        kernel,
        out_shape=jax.ShapeDtypeStruct((rows, l_out), x.dtype),
        grid_spec=pl.GridSpec(grid=grid, in_specs=in_specs, out_specs=out_specs),
        compiler_params=pltpu.CompilerParams(
            dimension_semantics=dim_sem,
            vmem_limit_bytes=_DEFAULT_VMEM_LIMIT_BYTES,
        ),
        cost_estimate=cost,
    )(x2)

    return out.reshape(*lead, l_out)


if __name__ == "__main__":
    key = jax.random.PRNGKey(0)
    k1, k2, k3, k4, k5 = jax.random.split(key, 5)

    def check(x, chomp, **kw):
        y = jax.block_until_ready(chomp1d(x, chomp, **kw))
        y_ref = x[..., : x.shape[-1] - chomp] if chomp > 0 else x
        assert y.shape == y_ref.shape, (y.shape, y_ref.shape)
        assert jnp.array_equal(y, y_ref), f"mismatch: shape={x.shape}, chomp={chomp}"
        return y

    # 1) Small TCN-like shape, non-lane-aligned kept length (slice kernel, full-L block).
    x1 = jax.random.normal(k1, (2, 4, 16), dtype=jnp.float32)
    check(x1, 3, min_pallas_bytes=0)

    # 2) Lane-aligned kept length: chomped tail is never DMA'd (straight-copy kernel).
    x2 = jax.random.normal(k2, (2, 4, 256), dtype=jnp.float32)
    check(x2, 128, min_pallas_bytes=0)

    # 3) Non-aligned kept length where the input block is shrunk to ceil(l_out/128)*128 < L.
    x3 = jax.random.normal(k3, (2, 4, 512), dtype=jnp.float32)
    check(x3, 200, min_pallas_bytes=0)

    # 4) bf16: exercises the 16-row sublane-packing multiple on the row-tiled path.
    x4 = jax.random.normal(k4, (4, 32, 384), dtype=jnp.bfloat16)
    check(x4, 128, min_pallas_bytes=0)

    # 5) Column-tiled path (row too wide for the block budget), non-divisible edges.
    x5 = jax.random.normal(k5, (2, 4, 4096), dtype=jnp.float32)
    check(x5, 300, min_pallas_bytes=0, target_block_bytes=64 * 1024)

    # 6) Moderate size hitting the kernel with default thresholds (multi-step grid).
    x6 = jax.random.normal(key, (8, 64, 1024), dtype=jnp.float32)
    check(x6, 24)

    # 7) chomp_size == 0 passthrough.
    assert chomp1d(x1, 0) is x1

    print("KERNEL_OK")
</pallas_src>

<mosaic_0001>
module attributes {stable_mosaic.version = 11 : i64} {
  func.func @_slice_kernel(%arg0: i32, %arg1: memref<8x16xf32, #tpu.memory_space<vmem>>, %arg2: memref<8x13xf32, #tpu.memory_space<vmem>>) attributes {dimension_semantics = [#tpu.dimension_semantics<parallel>], iteration_bounds = array<i64: 1>, scalar_prefetch = 0 : i64, scratch_operands = 0 : i64, tpu.core_type = #tpu.core_type<tc>, window_params = [{transform_indices = @transform_0, window_bounds = array<i64: 8, 16>}, {transform_indices = @transform_1, window_bounds = array<i64: 8, 13>}]} {
    %c0 = arith.constant 0 : index
    %c0_0 = arith.constant 0 : index
    %0 = vector.load %arg1[%c0, %c0_0] : memref<8x16xf32, #tpu.memory_space<vmem>>, vector<8x13xf32>
    %c0_1 = arith.constant 0 : index
    %c0_2 = arith.constant 0 : index
    %1 = vector.load %arg2[%c0_1, %c0_2] : memref<8x13xf32, #tpu.memory_space<vmem>>, vector<8x13xf32>
    tpu.vector_store %arg2[%c0_1, %c0_2], %0 {strides = array<i32>} : memref<8x13xf32, #tpu.memory_space<vmem>>, vector<8x13xf32>,
    return
  }
  func.func @transform_0(%arg0: i32) -> (i32, i32) {
    %c0_i32 = arith.constant 0 : i32
    %c0_i32_0 = arith.constant 0 : i32
    return %arg0, %c0_i32 : i32, i32
  }
  func.func @transform_1(%arg0: i32) -> (i32, i32) {
    %c0_i32 = arith.constant 0 : i32
    %c0_i32_0 = arith.constant 0 : i32
    return %arg0, %c0_i32 : i32, i32
  }
}

</mosaic_0001>

<bundles_post_ra>
// kernel: tpu_custom_call.1
= control target key start
LH: loop header
LB: loop body
LE: loop exit
PB: predicated region body
PF: predicated region fallthrough
CT: control target
= control target key end

     0   :  { %6 = vsyncpa [#allocation3], 0  ;;  %s103_s0 = inlined_call_operand.hbm [shape: f32[8,16], index: 0, kind: input, shape index: {}]   ;;  %s104_s1 = inlined_call_operand.hbm [shape: f32[8,13], index: 1, kind: output, shape index: {}]  }
   0x1   :  { %7 = vsyncpa [#allocation4], 0  ;;  %s85_s6 = smov [#allocation2]  }
   0x2   :  { %s14_s7 = sshll.u32 %s85_s6, 4  ;;  %s15_s7 = int_to_ptr.vmem [resolvable:$true] %s14_s7 }
   0x3   :  { %s49_s8 = scalar_lea.vmem %s15_s7, 128  ;;  %p54_p1 = scmp.lt.s32.totalorder %s15_s7, %s15_s7 }
   0x4   :  { %p50_p0 = scmp.ne.s32.totalorder %s15_s7, %s49_s8  ;;  %p55_p2 = scmp.lt.s32.totalorder %s49_s8, %s49_s8 }
   0x6   :  { %p56_p3 = por %p55_p2, %p54_p1 }
   0x8   :  { %p57_p4 = pnand %p56_p3, %p50_p0 }
   0xa   :  { %60 = shalt.err (!%p57_p4)
}
   0xb   :  { %17 = dma.hbm_to_vmem [thread:$0]  %s103_s0, 128, %s15_s7, [#allocation3]  }
   0xc   :  { %81 = dma.done.wait [#allocation3], 128  }
   0xd   :  { %82 = vsyncadd [#allocation3], 4294967168  ;;  %s86_s11 = smov [#allocation5]   ;;  %vm22_vm0 = vcmask 105472   ;;  %v21_v0 = vld [vmem:[#allocation2] sm:$0xff] }
   0xe   :  { %s30_s12 = sshll.u32 %s86_s11, 4  ;;  %23 = vst.msk [vmem:[#allocation5] sm:$0xff] %vm22_vm0, %v21_v0  ;;  %s31_s12 = int_to_ptr.vmem [resolvable:$true] %s30_s12 }
   0xf   :  { %s61_s13 = scalar_lea.vmem %s31_s12, 128  ;;  %p66_p6 = scmp.lt.s32.totalorder %s31_s12, %s31_s12 }
  0x10   :  { %p62_p5 = scmp.ne.s32.totalorder %s31_s12, %s61_s13  ;;  %p67_p7 = scmp.lt.s32.totalorder %s61_s13, %s61_s13 }
  0x12   :  { %p68_p8 = por %p67_p7, %p66_p6 }
  0x14   :  { %p69_p9 = pnand %p68_p8, %p62_p5 }
  0x16   :  { %72 = shalt.err (!%p69_p9)
}
  0x17   :  { %33 = dma.vmem_to_hbm [thread:$0]  %s31_s12, 128, %s104_s1, [#allocation4]  }
  0x18   :  { %83 = dma.done.wait [#allocation4], 128  }
  0x19   :  { %84 = vsyncadd [#allocation4], 4294967168 }
  0x1a   :  { %37 = vsyncpa [#allocation3], 1 }
  0x1b   :  { %38 = vsyncpa [#allocation4], 1 }

</bundles_post_ra>
